<compile_context>
chip_gen: v5e
topology: v5e:2x2
jax: 0.10.0
libtpu: 0.0.40
codegen_flags: <defaults>
</compile_context>

<pallas_src>
import functools

import jax
import jax.numpy as jnp
from jax import lax
from jax.experimental import pallas as pl
from jax.experimental.pallas import tpu as pltpu


def _attention_kernel(x_ref, wqkv_ref, wproj_ref, bproj_ref,
                      o_ref, attn_ref, acc_ref):
    # Per grid step (b, qi, h):
    #   x_ref:     (1, N, C)     bf16   all tokens of batch b
    #   wqkv_ref:  (H, C, 3*hd)  bf16   resident; per-head fused [q|k|v] columns
    #                                   (softmax scale pre-folded into q columns)
    #   wproj_ref: (H, hd, C)    bf16   resident; per-head rows of W_proj
    #   bproj_ref: (1, C)        f32    resident
    #   o_ref:     (1, tq, C)           output tile (resident across head axis)
    #   attn_ref:  (1, 1, tq, N) f32    this head's softmax probabilities
    #   acc_ref:   (tq, C)       f32    VMEM accumulator across heads
    qi = pl.program_id(1)
    h = pl.program_id(2)
    num_h = pl.num_programs(2)

    N = x_ref.shape[1]
    tq = o_ref.shape[1]
    hd = wproj_ref.shape[1]

    x = x_ref[0]                                     # (N, C) bf16
    w = wqkv_ref[h]                                  # (C, 3*hd) bf16

    if tq == N:
        # Single query tile: one fused 3*hd-wide MXU pass produces q, k, v.
        qkv = jnp.dot(x, w, preferred_element_type=jnp.float32)          # (N, 3*hd)
        q = qkv[:, :hd].astype(jnp.bfloat16)                             # (N, hd)
        k = qkv[:, hd:2 * hd].astype(jnp.bfloat16)                       # (N, hd)
        v = qkv[:, 2 * hd:].astype(jnp.bfloat16)                         # (N, hd)
    else:
        # Query-tiled: k/v from all tokens, q only from this tile's rows.
        q_start = pl.multiple_of(qi * tq, tq)
        x_q = x_ref[0, pl.ds(q_start, tq), :]                            # (tq, C)
        kv = jnp.dot(x, w[:, hd:], preferred_element_type=jnp.float32)   # (N, 2*hd)
        q = jnp.dot(x_q, w[:, :hd],
                    preferred_element_type=jnp.float32).astype(jnp.bfloat16)
        k = kv[:, :hd].astype(jnp.bfloat16)
        v = kv[:, hd:].astype(jnp.bfloat16)

    # Scores: q @ k^T (scale already folded into the q weight columns).
    s = lax.dot_general(q, k, dimension_numbers=(((1,), (1,)), ((), ())),
                        preferred_element_type=jnp.float32)              # (tq, N)

    # Softmax in f32; exact normalization (attn is a module output).
    s = s - jnp.max(s, axis=-1, keepdims=True)
    e = jnp.exp(s)
    p = e * pl.reciprocal(jnp.sum(e, axis=-1, keepdims=True), approx=False)
    attn_ref[0, 0] = p

    # Context, then this head's slice of the output projection; the head concat
    # is folded into an f32 accumulation of (tq, hd) @ (hd, C) contributions.
    ctx = jnp.dot(p.astype(jnp.bfloat16), v,
                  preferred_element_type=jnp.float32)                    # (tq, hd)
    contrib = jnp.dot(ctx.astype(jnp.bfloat16), wproj_ref[h],
                      preferred_element_type=jnp.float32)                # (tq, C)

    @pl.when(h == 0)
    def _():
        acc_ref[...] = contrib          # init folded into first head (no zero-store)

    @pl.when(h > 0)
    def _():
        acc_ref[...] += contrib

    @pl.when(h == num_h - 1)
    def _():
        o_ref[0] = (acc_ref[...] + bproj_ref[...]).astype(o_ref.dtype)


def prepare_attention_params(w_qkv, w_proj, b_proj, *, num_heads, qk_scale=None):
    """One-time parameter prep (do NOT call per forward).

    w_qkv: (C, 3C) pre-transposed nn.Linear weight, columns ordered [q|k|v].
    w_proj: (C, C) pre-transposed. b_proj: (1, C) or (C,).
    Returns kernel-layout params: (w_qkv_h, w_proj_h, b_proj_f32)."""
    C = w_qkv.shape[0]
    H = num_heads
    hd = C // H
    scale = qk_scale if qk_scale is not None else hd ** (-0.5)

    w4 = w_qkv.reshape(C, 3, H, hd).astype(jnp.float32)
    # Fold the softmax scale into the q columns (exact: qkv_bias=False).
    sv = jnp.asarray([scale, 1.0, 1.0], dtype=jnp.float32).reshape(1, 3, 1, 1)
    w4 = w4 * sv
    # Head-major fused per-head weight: (H, C, 3*hd), columns [q|k|v] of width hd.
    w_qkv_h = jnp.transpose(w4, (2, 0, 1, 3)).reshape(H, C, 3 * hd).astype(jnp.bfloat16)
    # Per-head rows of W_proj: (H, hd, C).
    w_proj_h = w_proj.reshape(H, hd, C).astype(jnp.bfloat16)
    b = jnp.asarray(b_proj, jnp.float32).reshape(1, C)
    return w_qkv_h, w_proj_h, b


@jax.jit
def attention_forward(x, w_qkv_h, w_proj_h, b_proj):
    """x: (B, N, C). Params from prepare_attention_params.
    Returns (out (B, N, C), attn (B, H, N, N))."""
    B, N, C = x.shape
    H, hd, _ = w_proj_h.shape
    assert H * hd == C

    # Query tile: bound VMEM/vreg pressure of the (tq, N) score tile and give
    # v7x's 2 TensorCores a parallel axis even at B == 1.
    if N > 256 and N % 256 == 0:
        tq = 256
    elif N > 128 and N % 128 == 0:
        tq = 128
    else:
        tq = N
    nq = N // tq

    x_bf16 = x.astype(jnp.bfloat16)

    # VMEM requirement estimate (resident weights + double-buffered blocks +
    # scratch), with 2x headroom, capped below v7x's 64 MiB physical VMEM.
    vmem_est = (
        H * C * 3 * hd * 2          # resident fused qkv weights (bf16)
        + H * hd * C * 2            # resident proj weights (bf16)
        + 2 * N * C * 2             # x block, double-buffered (bf16)
        + 2 * tq * C * 4            # out block, double-buffered
        + 2 * tq * N * 4            # attn block, double-buffered (f32)
        + tq * C * 4                # f32 accumulator scratch
        + 2 * C * 4                 # bias
    )
    vmem_limit = int(min(max(2 * vmem_est, 16 * 1024 * 1024), 56 * 1024 * 1024))

    out, attn = pl.pallas_call(
        _attention_kernel,
        out_shape=(
            jax.ShapeDtypeStruct((B, N, C), x.dtype),
            jax.ShapeDtypeStruct((B, H, N, N), jnp.float32),
        ),
        grid_spec=pltpu.PrefetchScalarGridSpec(
            num_scalar_prefetch=0,
            grid=(B, nq, H),
            in_specs=[
                pl.BlockSpec((1, N, C), lambda b, q, h: (b, 0, 0)),        # x (per batch)
                pl.BlockSpec((H, C, 3 * hd), lambda b, q, h: (0, 0, 0)),   # fused qkv W (resident)
                pl.BlockSpec((H, hd, C), lambda b, q, h: (0, 0, 0)),       # proj W (resident)
                pl.BlockSpec((1, C), lambda b, q, h: (0, 0)),              # proj bias (resident)
            ],
            out_specs=[
                pl.BlockSpec((1, tq, C), lambda b, q, h: (b, q, 0)),       # out (resident over h)
                pl.BlockSpec((1, 1, tq, N), lambda b, q, h: (b, h, q, 0)), # attn probs
            ],
            scratch_shapes=[pltpu.VMEM((tq, C), jnp.float32)],
        ),
        compiler_params=pltpu.CompilerParams(
            dimension_semantics=("parallel", "parallel", "arbitrary"),
            vmem_limit_bytes=vmem_limit,
        ),
    )(x_bf16, w_qkv_h, w_proj_h, b_proj)
    return out, attn


def _reference(x, w_qkv, w_proj, b_proj, num_heads):
    B, N, C = x.shape
    hd = C // num_heads
    scale = hd ** (-0.5)
    qkv = x @ w_qkv                                            # (B, N, 3C)
    qkv = qkv.reshape(B, N, 3, num_heads, hd).transpose(2, 0, 3, 1, 4)
    q, k, v = qkv[0], qkv[1], qkv[2]                           # (B, H, N, hd)
    attn = jnp.einsum("bhqd,bhkd->bhqk", q, k) * scale
    attn = jax.nn.softmax(attn, axis=-1)
    out = jnp.einsum("bhqk,bhkd->bhqd", attn, v)               # (B, H, N, hd)
    out = out.transpose(0, 2, 1, 3).reshape(B, N, C)
    out = out @ w_proj + b_proj.reshape(1, C)
    return out, attn


if __name__ == "__main__":
    def run_case(key, B, N, C, H):
        kx, kqkv, kproj, kb = jax.random.split(key, 4)
        x = jax.random.normal(kx, (B, N, C), dtype=jnp.float32)
        # nn.Linear weights pre-transposed to (in, out); deterministic synthetic params.
        w_qkv = jax.random.normal(kqkv, (C, 3 * C), dtype=jnp.float32) * 0.05
        w_proj = jax.random.normal(kproj, (C, C), dtype=jnp.float32) * 0.05
        b_proj = jax.random.normal(kb, (1, C), dtype=jnp.float32) * 0.05

        params = prepare_attention_params(w_qkv, w_proj, b_proj, num_heads=H)
        out, attn = attention_forward(x, *params)
        out = jax.block_until_ready(out)
        attn = jax.block_until_ready(attn)

        ref_out, ref_attn = _reference(x, w_qkv, w_proj, b_proj, H)
        # bf16 MXU operands -> slightly looser tolerances than pure f32.
        assert jnp.allclose(out, ref_out, atol=2e-2, rtol=2e-2), \
            float(jnp.max(jnp.abs(out - ref_out)))
        assert jnp.allclose(attn, ref_attn, atol=1e-2, rtol=1e-2), \
            float(jnp.max(jnp.abs(attn - ref_attn)))

    key = jax.random.PRNGKey(0)
    k1, k2 = jax.random.split(key)
    run_case(k1, B=2, N=8, C=32, H=4)     # single-query-tile path (tq == N)
    run_case(k2, B=1, N=256, C=64, H=4)   # query-tiled path (tq = 128, nq = 2)
    print("KERNEL_OK")
</pallas_src>

<mosaic_0001>
module attributes {stable_mosaic.version = 11 : i64} {
  func.func @_attention_kernel(%arg0: i32, %arg1: i32, %arg2: i32, %arg3: memref<1x8x32xbf16, #tpu.memory_space<vmem>>, %arg4: memref<4x32x24xbf16, #tpu.memory_space<vmem>>, %arg5: memref<4x8x32xbf16, #tpu.memory_space<vmem>>, %arg6: memref<1x32xf32, #tpu.memory_space<vmem>>, %arg7: memref<1x8x32xf32, #tpu.memory_space<vmem>>, %arg8: memref<1x1x8x8xf32, #tpu.memory_space<vmem>>, %arg9: memref<8x32xf32, #tpu.memory_space<vmem>>) attributes {dimension_semantics = [#tpu.dimension_semantics<parallel>, #tpu.dimension_semantics<parallel>, #tpu.dimension_semantics<arbitrary>], iteration_bounds = array<i64: 2, 1, 4>, scalar_prefetch = 0 : i64, scratch_operands = 1 : i64, tpu.core_type = #tpu.core_type<tc>, window_params = [{transform_indices = @transform_0, window_bounds = array<i64: 1, 8, 32>}, {pipeline_mode = #tpu.pipeline_mode<synchronous>, transform_indices = @transform_1, window_bounds = array<i64: 4, 32, 24>}, {pipeline_mode = #tpu.pipeline_mode<synchronous>, transform_indices = @transform_2, window_bounds = array<i64: 4, 8, 32>}, {pipeline_mode = #tpu.pipeline_mode<synchronous>, transform_indices = @transform_3, window_bounds = array<i64: 1, 32>}, {transform_indices = @transform_4, window_bounds = array<i64: 1, 8, 32>}, {transform_indices = @transform_5, window_bounds = array<i64: 1, 1, 8, 8>}]} {
    %c0 = arith.constant 0 : index
    %c0_0 = arith.constant 0 : index
    %c0_1 = arith.constant 0 : index
    %0 = vector.load %arg3[%c0, %c0_0, %c0_1] : memref<1x8x32xbf16, #tpu.memory_space<vmem>>, vector<1x8x32xbf16>
    %1 = vector.shape_cast %0 : vector<1x8x32xbf16> to vector<8x32xbf16>
    %2 = arith.index_cast %arg2 : i32 to index
    %c0_2 = arith.constant 0 : index
    %c0_3 = arith.constant 0 : index
    %3 = vector.load %arg4[%2, %c0_2, %c0_3] : memref<4x32x24xbf16, #tpu.memory_space<vmem>>, vector<1x32x24xbf16>
    %4 = vector.shape_cast %3 : vector<1x32x24xbf16> to vector<32x24xbf16>
    %cst = arith.constant dense<0.000000e+00> : vector<8x24xf32>
    %5 = tpu.matmul %1, %4, %cst {dimension_numbers = #tpu.dot_dimension_numbers<[1], [0], [0], [1], [0, 0, 1, 1], [], []>} : vector<8x32xbf16>, vector<32x24xbf16>, vector<8x24xf32> -> vector<8x24xf32>
    %6 = vector.extract_strided_slice %5 {offsets = [0, 0], sizes = [8, 8], strides = [1, 1]} : vector<8x24xf32> to vector<8x8xf32>
    %7 = arith.truncf %6 : vector<8x8xf32> to vector<8x8xbf16>
    %8 = vector.extract_strided_slice %5 {offsets = [0, 8], sizes = [8, 8], strides = [1, 1]} : vector<8x24xf32> to vector<8x8xf32>
    %9 = arith.truncf %8 : vector<8x8xf32> to vector<8x8xbf16>
    %10 = vector.extract_strided_slice %5 {offsets = [0, 16], sizes = [8, 8], strides = [1, 1]} : vector<8x24xf32> to vector<8x8xf32>
    %11 = arith.truncf %10 : vector<8x8xf32> to vector<8x8xbf16>
    %cst_4 = arith.constant dense<0.000000e+00> : vector<8x8xf32>
    %12 = tpu.matmul %7, %9, %cst_4 {dimension_numbers = #tpu.dot_dimension_numbers<[1], [1], [0], [0], [0, 0, 1, 0], [], []>} : vector<8x8xbf16>, vector<8x8xbf16>, vector<8x8xf32> -> vector<8x8xf32>
    %cst_5 = arith.constant dense<0xFF800000> : vector<8xf32>
    %13 = vector.multi_reduction <maximumf>, %12, %cst_5 [1] : vector<8x8xf32> to vector<8xf32>
    %14 = vector.shape_cast %13 : vector<8xf32> to vector<8x1xf32>
    %15 = vector.broadcast %14 : vector<8x1xf32> to vector<8x8xf32>
    %16 = arith.subf %12, %15 : vector<8x8xf32>
    %17 = math.exp %16 : vector<8x8xf32>
    %cst_6 = arith.constant dense<0.000000e+00> : vector<8xf32>
    %18 = vector.multi_reduction <add>, %17, %cst_6 [1] : vector<8x8xf32> to vector<8xf32>
    %19 = vector.shape_cast %18 : vector<8xf32> to vector<8x1xf32>
    %20 = tpu.reciprocal %19 : vector<8x1xf32> -> vector<8x1xf32>
    %21 = vector.broadcast %20 : vector<8x1xf32> to vector<8x8xf32>
    %22 = arith.mulf %17, %21 : vector<8x8xf32>
    %c0_7 = arith.constant 0 : index
    %c0_8 = arith.constant 0 : index
    %c0_9 = arith.constant 0 : index
    %c0_10 = arith.constant 0 : index
    %23 = vector.load %arg8[%c0_7, %c0_8, %c0_9, %c0_10] : memref<1x1x8x8xf32, #tpu.memory_space<vmem>>, vector<1x1x8x8xf32>
    %24 = vector.shape_cast %23 : vector<1x1x8x8xf32> to vector<8x8xf32>
    %25 = vector.shape_cast %22 : vector<8x8xf32> to vector<1x1x8x8xf32>
    tpu.vector_store %arg8[%c0_7, %c0_8, %c0_9, %c0_10], %25 {strides = array<i32>} : memref<1x1x8x8xf32, #tpu.memory_space<vmem>>, vector<1x1x8x8xf32>,
    %26 = arith.truncf %22 : vector<8x8xf32> to vector<8x8xbf16>
    %cst_11 = arith.constant dense<0.000000e+00> : vector<8x8xf32>
    %27 = tpu.matmul %26, %11, %cst_11 {dimension_numbers = #tpu.dot_dimension_numbers<[1], [0], [0], [1], [0, 0, 1, 1], [], []>} : vector<8x8xbf16>, vector<8x8xbf16>, vector<8x8xf32> -> vector<8x8xf32>
    %28 = arith.truncf %27 : vector<8x8xf32> to vector<8x8xbf16>
    %29 = arith.index_cast %arg2 : i32 to index
    %c0_12 = arith.constant 0 : index
    %c0_13 = arith.constant 0 : index
    %30 = vector.load %arg5[%29, %c0_12, %c0_13] : memref<4x8x32xbf16, #tpu.memory_space<vmem>>, vector<1x8x32xbf16>
    %31 = vector.shape_cast %30 : vector<1x8x32xbf16> to vector<8x32xbf16>
    %cst_14 = arith.constant dense<0.000000e+00> : vector<8x32xf32>
    %32 = tpu.matmul %28, %31, %cst_14 {dimension_numbers = #tpu.dot_dimension_numbers<[1], [0], [0], [1], [0, 0, 1, 1], [], []>} : vector<8x8xbf16>, vector<8x32xbf16>, vector<8x32xf32> -> vector<8x32xf32>
    %c0_i32 = arith.constant 0 : i32
    %33 = arith.cmpi eq, %arg2, %c0_i32 : i32
    %34 = arith.extui %33 : i1 to i32
    %c0_i32_15 = arith.constant 0 : i32
    %35 = arith.cmpi ne, %34, %c0_i32_15 : i32
    scf.if %35 {
      %c0_19 = arith.constant 0 : index
      %c0_20 = arith.constant 0 : index
      %42 = vector.load %arg9[%c0_19, %c0_20] : memref<8x32xf32, #tpu.memory_space<vmem>>, vector<8x32xf32>
      tpu.vector_store %arg9[%c0_19, %c0_20], %32 {strides = array<i32>} : memref<8x32xf32, #tpu.memory_space<vmem>>, vector<8x32xf32>,
    } else {
    }
    %c0_i32_16 = arith.constant 0 : i32
    %36 = arith.cmpi sgt, %arg2, %c0_i32_16 : i32
    %37 = arith.extui %36 : i1 to i32
    %c0_i32_17 = arith.constant 0 : i32
    %38 = arith.cmpi ne, %37, %c0_i32_17 : i32
    scf.if %38 {
      %c0_19 = arith.constant 0 : index
      %c0_20 = arith.constant 0 : index
      %42 = vector.load %arg9[%c0_19, %c0_20] : memref<8x32xf32, #tpu.memory_space<vmem>>, vector<8x32xf32>
      %43 = arith.addf %42, %32 : vector<8x32xf32>
      %c0_21 = arith.constant 0 : index
      %c0_22 = arith.constant 0 : index
      %44 = vector.load %arg9[%c0_21, %c0_22] : memref<8x32xf32, #tpu.memory_space<vmem>>, vector<8x32xf32>
      tpu.vector_store %arg9[%c0_21, %c0_22], %43 {strides = array<i32>} : memref<8x32xf32, #tpu.memory_space<vmem>>, vector<8x32xf32>,
    } else {
    }
    %c3_i32 = arith.constant 3 : i32
    %39 = arith.cmpi eq, %arg2, %c3_i32 : i32
    %40 = arith.extui %39 : i1 to i32
    %c0_i32_18 = arith.constant 0 : i32
    %41 = arith.cmpi ne, %40, %c0_i32_18 : i32
    scf.if %41 {
      %c0_19 = arith.constant 0 : index
      %c0_20 = arith.constant 0 : index
      %42 = vector.load %arg9[%c0_19, %c0_20] : memref<8x32xf32, #tpu.memory_space<vmem>>, vector<8x32xf32>
      %c0_21 = arith.constant 0 : index
      %c0_22 = arith.constant 0 : index
      %43 = vector.load %arg6[%c0_21, %c0_22] : memref<1x32xf32, #tpu.memory_space<vmem>>, vector<1x32xf32>
      %44 = vector.broadcast %43 : vector<1x32xf32> to vector<8x32xf32>
      %45 = arith.addf %42, %44 : vector<8x32xf32>
      %c0_23 = arith.constant 0 : index
      %c0_24 = arith.constant 0 : index
      %c0_25 = arith.constant 0 : index
      %46 = vector.load %arg7[%c0_23, %c0_24, %c0_25] : memref<1x8x32xf32, #tpu.memory_space<vmem>>, vector<1x8x32xf32>
      %47 = vector.shape_cast %46 : vector<1x8x32xf32> to vector<8x32xf32>
      %48 = vector.shape_cast %45 : vector<8x32xf32> to vector<1x8x32xf32>
      tpu.vector_store %arg7[%c0_23, %c0_24, %c0_25], %48 {strides = array<i32>} : memref<1x8x32xf32, #tpu.memory_space<vmem>>, vector<1x8x32xf32>,
    } else {
    }
    return
  }
  func.func @transform_0(%arg0: i32, %arg1: i32, %arg2: i32) -> (i32, i32, i32) {
    %c0_i32 = arith.constant 0 : i32
    %c0_i32_0 = arith.constant 0 : i32
    %c0_i32_1 = arith.constant 0 : i32
    return %arg0, %c0_i32, %c0_i32_0 : i32, i32, i32
  }
  func.func @transform_1(%arg0: i32, %arg1: i32, %arg2: i32) -> (i32, i32, i32) {
    %c0_i32 = arith.constant 0 : i32
    %c0_i32_0 = arith.constant 0 : i32
    %c0_i32_1 = arith.constant 0 : i32
    %c0_i32_2 = arith.constant 0 : i32
    return %c0_i32, %c0_i32_0, %c0_i32_1 : i32, i32, i32
  }
  func.func @transform_2(%arg0: i32, %arg1: i32, %arg2: i32) -> (i32, i32, i32) {
    %c0_i32 = arith.constant 0 : i32
    %c0_i32_0 = arith.constant 0 : i32
    %c0_i32_1 = arith.constant 0 : i32
    %c0_i32_2 = arith.constant 0 : i32
    return %c0_i32, %c0_i32_0, %c0_i32_1 : i32, i32, i32
  }
  func.func @transform_3(%arg0: i32, %arg1: i32, %arg2: i32) -> (i32, i32) {
    %c0_i32 = arith.constant 0 : i32
    %c0_i32_0 = arith.constant 0 : i32
    %c0_i32_1 = arith.constant 0 : i32
    return %c0_i32, %c0_i32_0 : i32, i32
  }
  func.func @transform_4(%arg0: i32, %arg1: i32, %arg2: i32) -> (i32, i32, i32) {
    %c0_i32 = arith.constant 0 : i32
    %c0_i32_0 = arith.constant 0 : i32
    return %arg0, %arg1, %c0_i32 : i32, i32, i32
  }
  func.func @transform_5(%arg0: i32, %arg1: i32, %arg2: i32) -> (i32, i32, i32, i32) {
    %c0_i32 = arith.constant 0 : i32
    %c0_i32_0 = arith.constant 0 : i32
    return %arg0, %arg2, %arg1, %c0_i32 : i32, i32, i32, i32
  }
}

</mosaic_0001>

<bundles_post_ra>
// kernel: attention_forward.1
= control target key start
LH: loop header
LB: loop body
LE: loop exit
PB: predicated region body
PF: predicated region fallthrough
CT: control target
= control target key end

     0   :  { %s1129_s0 = inlined_call_operand.vmem [shape: bf16[2,8,32], index: 0, kind: input, shape index: {}]   ;;  %s1130_s1 = inlined_call_operand.vmem [shape: bf16[4,32,24], index: 1, kind: input, shape index: {}]   ;;  %s1131_s2 = inlined_call_operand.vmem [shape: bf16[4,8,32], index: 2, kind: input, shape index: {}]   ;;  %s1132_s3 = inlined_call_operand.vmem [shape: f32[1,32], index: 3, kind: input, shape index: {}]   ;;  %s1133_s4 = inlined_call_operand.hbm [shape: f32[2,8,32], index: 4, kind: output, shape index: {0}]   ;;  %s1134_s5 = inlined_call_operand.hbm [shape: f32[2,4,8,8], index: 5, kind: output, shape index: {1}]  }
   0x1   :  { %1143 = sst [smem:[#allocation15_spill]] %s1129_s0 }
   0x2   :  { %1144 = sst [smem:[#allocation16_spill]] %s1130_s1 }
   0x3   :  { %1145 = sst [smem:[#allocation17_spill]] %s1131_s2 }
   0x4   :  { %1146 = sst [smem:[#allocation18_spill]] %s1132_s3 }
   0x5   :  { %11 = vsyncpa [#allocation4], 0 }
   0x6   :  { %13 = vsyncpa [#allocation4 + $0x1], 0 }
   0x7   :  { %14 = vsyncpa [#allocation6], 0 }
   0x8   :  { %16 = vsyncpa [#allocation6 + $0x1], 0  ;;  %s892_s18 = smov 0   ;;  %s894_s19 = smov 0  }
   0x9   :  { %s896_s20 = smov 0   ;;  %s898_s21 = smov 0  }
   0xa   :  { %s900_s22 = smov 0   ;;  %s902_s23 = smov 0  }
   0xb   :  { %s904_s24 = smov 0   ;;  %s906_s25 = smov 0  }
   0xc   :  { %s908_s26 = smov 0   ;;  %s910_s27 = smov 0  }
   0xd   :  { %s912_s28 = smov 0  }
   0xe LB: > { %1147 = sst [smem:[#allocation9_spill]] %s838_s23  ;;  %s565_s29 = sadd.s32 4294967295, %s858_s28   ;;  %s858_s28 = sphi %s912_s28, %s22_s28   ;;  %s854_s27 = sphi %s910_s27, %s1171_s27   ;;  %s850_s26 = sphi %s908_s26, %s1170_s26   ;;  %s846_s25 = sphi %s906_s25, %s1169_s25   ;;  %s842_s24 = sphi %s904_s24, %s1168_s24   ;;  %s838_s23 = sphi %s902_s23, %s1167_s23   ;;  %s834_s22 = sphi %s900_s22, %s1176_s22   ;;  %s830_s21 = sphi %s898_s21, %s1175_s21   ;;  %s826_s20 = sphi %s896_s20, %s1174_s20   ;;  %s822_s19 = sphi %s894_s19, %s1173_s19   ;;  %s818_s18 = sphi %s892_s18, %s1172_s18  }
   0xf   : > { %1148 = sst [smem:[#allocation10_spill]] %s850_s26  ;;  %s566_s30 = sadd.s32 4294967294, %s858_s28  }
  0x10   : > { %1149 = sst [smem:[#allocation11_spill]] %s854_s27  ;;  %s34_s6 = sadd.s32 1, %s850_s26 }
  0x11   : > { %s41_s7 = sadd.s32 1, %s854_s27  ;;  %p35_p0 = scmp.ge.s32.totalorder %s34_s6, 4 }
  0x12   : > { %s139_s8 = sadd.s32 1, %s838_s23  ;;  %p149_p1 = scmp.ne.s32.totalorder %s838_s23, %s834_s22 }
  0x13   : > { %p954_p2 = scmp.eq.s32.totalorder %s565_s29, 7  ;;  %s1178_s6 = smov (%p35_p0, %s34_s6), 0 }
  0x14   : > { %1151 = sst [smem:[#allocation12_spill]] %s1178_s6  ;;  %s1180_s7 = smov (!%p35_p0, %s41_s7), %s854_s27 }
  0x15   : > { %p963_p3 = por %p954_p2, %p149_p1  ;;  %p155_p4 = scmp.ne.s32.totalorder %s834_s22, %s830_s21 }
  0x16   : > { %p43_p5 = scmp.ge.s32.totalorder %s1180_s7, 2  ;;  %p969_p6 = scmp.eq.s32.totalorder %s566_s30, 7 }
  0x17   : > { %s163_s12 = ssub.s32 %s850_s26, %s1178_s6  ;;  %s169_s13 = sadd.s32 1, %s826_s20 }
  0x18   : > { %s1182_s7 = smov (%p43_p5, %s1180_s7), 0  ;;  %p980_p7 = por %p969_p6, %p155_p4 }
  0x19   : > { %1154 = sst [smem:[#allocation13_spill]] %s1182_s7  ;;  %p179_p8 = scmp.ne.s32.totalorder %s826_s20, %s822_s19 }
  0x1a   : > { %s134_s15 = ssub.s32 %s854_s27, %s1182_s7  ;;  %p185_p9 = scmp.ne.s32.totalorder %s822_s19, %s818_s18 }
  0x1b   : > { %p137_p10 = scmp.eq.s32.totalorder %s134_s15, 0  ;;  %s164_s16 = sor.u32 %s163_s12, %s134_s15 }
  0x1c   : > { %p167_p11 = scmp.eq.s32.totalorder %s164_s16, 0  ;;  %p992_p12 = por %p179_p8, %p954_p2 }
  0x1d   : > { %s997_s29 = scalar_select %p137_p10, %s838_s23, %s139_s8  }
  0x1e   : > { %s1000_s30 = scalar_select %p167_p11, %s826_s20, %s169_s13  }
  0x1f   : > { %1157 = sst [smem:[#allocation14_spill]] %s997_s29  ;;  %p1004_p13 = por %p185_p9, %p969_p6 }
  0x20   : > { %p569_p0 = scmp.ge.s32.totalorder %s858_s28, 1  ;;  %p220_p1 = scmp.lt.s32.totalorder %s858_s28, 9 }
  0x22   : > { %p221_p4 = pnand %p569_p0, %p220_p1 }
  0x23   : > { %s1139_s9 = sand.u32 (!%p221_p4), 1, %s834_s22   ;;  %s598_s12 = sshll.u32 (!%p221_p4), %s842_s24, 4 }
  0x24   : > { %224 = sbr.rel (%p221_p4) target bundleno = 1032 (0x408), region = 36  ;;  %s1014_s8 = sshll.u32 (!%p221_p4), %s1139_s9, 3 }
  0x25   : > { %s1159_s1 = sld [smem:[#allocation16_spill]] (!%p221_p4)  ;;  %p252_p2 = scmp.lt.s32.totalorder (!%p221_p4), %s846_s25, 1 }
  0x26   : > { %s1160_s0 = sld [smem:[#allocation15_spill]] (!%p221_p4)  ;;  %s860_s9 = smov (!%p221_p4), 120  }
  0x27   : > { %s861_s26 = smov (!%p221_p4), 112   ;;  %s1140_s27 = sand.u32 (!%p221_p4), 1, %s822_s19  }
  0x28   : > { %s1161_s2 = sld [smem:[#allocation17_spill]] (!%p221_p4)  ;;  %p588_p5 = scmp.ne.s32.totalorder (!%p221_p4), %s842_s24, 0 }
  0x29   : > { %s253_s16 = scalar_select %p252_p2, %s846_s25, 1  ;;  %vm277_vm0 = vcmask 261120   ;;  %vm298_vm1 = vcmask 64512   ;;  %vm349_vm6 = vcmask 1043456  }
  0x2b   : > { %s260_s15 = scalar_lea.vmem %s1159_s1, %s598_s12  ;;  %s572_s7 = sshll.u32 %s253_s16, 2 }
  0x2c   : > { %v600_v0 = vld [vmem:[%s260_s15 + $0x8] sm:$0xff]  ;;  %v599_v1 = vld [vmem:[%s260_s15] sm:$0xff]  ;;  %s255_s29 = scalar_lea.vmem %s1160_s0, %s572_s7  ;;  %s1032_s7 = sshll.u32 %s1140_s27, 3 }
  0x2d   : > { %287 = vmatpush.bf16.msra.mxu0 %v600_v0  ;;  %v257_v2 = vld [vmem:[%s255_s29] sm:$0xf]  ;;  %s1141_s29 = scalar_lea.vmem [#allocation5], %s1032_s7  ;;  %s244_s15 = scalar_lea.vmem [#allocation3], %s1014_s8 }
  0x31   : > { %288 = vmatpush.bf16.msra.mxu0 %v599_v1 }
  0x34   : > { %583 = vmatmul.msk.bf16.vlgmr.msra.gmra.mxu0 %vm277_vm0, %v257_v2 }
  0xb1   : > { %v290_v3 = vpop.f32.mrf.mxu0 }
  0xb2   : > { %v294_v4 = vpack.c.bf16 %v290_v3, %v290_v3 }
  0xb4   : > { %296 = vrot.lane.b32.xlu0 %v294_v4, %s860_s9  ;;  %s586_s9 = sshll.u32 %s842_s24, 2 }
  0xb5   : > { %s368_s11 = scalar_lea.vmem %s1161_s2, %s586_s9 }
  0xb6   : > { %v369_v31 = vld [vmem:[%s368_s11] sm:$0xf] }
  0xb7   : > { %v374_v32 = vsel %vm349_vm6, %v369_v31, 0 }
  0xb8   : > { %383 = vmatpush.bf16.msra.mxu3 %v374_v32 }
  0xb9   : > { %v292_v5 = vpop.f32.mrf.mxu0 }
 0x126   : > { %v297_v6 = vpop.permute.xlu0 %296 }
 0x127   : > { %v303_v7 = vsel %vm298_vm1, %v297_v6, 0 }
 0x128   : > { %312 = vmatpush.bf16.xpose.msra.mxu1 %v303_v7 }
 0x12f   : > { %584 = vmatmul.msk.bf16.vlgmr.msra.gmra.mxu1 %vm298_vm1, %v294_v4 }
 0x1ac   : > { %v314_v8 = vpop.f32.mrf.mxu1 }
 0x1ad   : > { %v318_v9 = vsel %vm298_vm1, %v314_v8, -inf }
 0x1ae   : > { %319 = vmax.xlane.f32.xlu0 %v318_v9 }
 0x1b4   : > { %v316_v10 = vpop.f32.mrf.mxu1 }
 0x221   : > { %v320_v11 = vpop.xlane.xlu0 %319 }
 0x222   : > { %v321_v12 = vsub.f32 %v314_v8, %v320_v11 }
 0x224   : > { %v322_v13 = vmul.f32 1.442695, %v321_v12 }
 0x226   : > { %703 = vpow2.f32 %v322_v13 }
 0x22c   : > { %v704_v14 = vpop.eup %703 }
 0x22d   : > { %v324_v15 = vsel %vm298_vm1, %v704_v14, 0.0 }
 0x22e   : > { %325 = vadd.xlane.f32.xlu1 %v324_v15 }
 0x247   : > { %344 = vrot.lane.b32.xlu1 %v294_v4, %s861_s26 }
 0x2a1   : > { %v326_v16 = vpop.xlane.xlu1 %325 }
 0x2a2   : > { %705 = vrcp.f32 %v326_v16  ;;  %v338_v20 = vand.u32 2147483648, %v326_v16  ;;  %v336_v22 = vand.u32 2147483647, %v326_v16  ;;  %vm332_vm3 = vweird.f32 %v326_v16 }
 0x2a4   : > { %v339_v24 = vor.u32 1.1754944e-38, %v338_v20  ;;  %vm337_vm5 = vcmp.eq.f32.partialorder %v336_v22, 8.507059e+37 }
 0x2a8   : > { %v706_v17 = vpop.eup %705 }
 0x2a9   : > { %v328_v18 = vmul.f32 %v706_v17, %v326_v16  ;;  %vm333_vm2 = vweird.f32 %v706_v17 }
 0x2aa   : > { %vm334_vm4 = vmor %vm332_vm3, %vm333_vm2 }
 0x2ab   : > { %v329_v19 = vsub.f32 1.0, %v328_v18 }
 0x2ad   : > { %v330_v21 = vmul.f32 %v706_v17, %v329_v19 }
 0x2af   : > { %v331_v23 = vadd.f32 %v706_v17, %v330_v21 }
 0x2b1   : > { %v335_v25 = vsel %vm334_vm4, %v706_v17, %v331_v23 }
 0x2b2   : > { %v340_v26 = vsel %vm337_vm5, %v339_v24, %v335_v25 }
 0x2b3   : > { %v341_v27 = vmul.f32 %v704_v14, %v340_v26 }
 0x2b5   : > { %342 = vst.msk [vmem:[%s1141_s29] sm:$0xff] %vm298_vm1, %v341_v27  ;;  %v343_v30 = vpack.c.bf16 %v341_v27, %v341_v27 }
 0x2b9   : > { %v345_v28 = vpop.permute.xlu1 %344 }
 0x2ba   : > { %v351_v29 = vsel %vm349_vm6, %v345_v28, 0 }
 0x2bb   : > { %360 = vmatpush.bf16.msra.mxu2 %v351_v29 }
 0x2be   : > { %585 = vmatmul.msk.bf16.vlgmr.msra.gmra.mxu2 %vm298_vm1, %v343_v30 }
 0x341   : > { %v362_v33 = vpop.f32.mrf.mxu2 }
 0x342   : > { %v366_v34 = vpack.c.bf16 %v362_v33, %v362_v33 }
 0x344   : > { %587 = vmatmul.msk.bf16.vlgmr.msra.gmra.mxu3 %vm298_vm1, %v366_v34 }
 0x349   : > { %v364_v35 = vpop.f32.mrf.mxu2 }
 0x3c7   : > { %v385_v36 = vpop.f32.mrf.mxu3 }
 0x3cb   : > { %392 = sbr.rel (%p588_p5) target bundleno = 977 (0x3d1), region = 40 }
 0x3cf   : > { %v387_v37 = vpop.f32.mrf.mxu3 }
 0x3d0   : > { %393 = vst.msk [vmem:[#allocation2] sm:$0xff] %vm277_vm0, %v385_v36 }
 0x3d1 PF: > { %p589_p6 = scmp.le.s32.totalorder %s842_s24, 0 }
 0x3d3   : > { %397 = sbr.rel (%p589_p6) target bundleno = 988 (0x3dc), region = 44 }
 0x3d8   : > { %v398_v38 = vld [vmem:[#allocation2] sm:$0xff] }
 0x3d9   : > { %v399_v39 = vadd.f32 %v398_v38, %v385_v36 }
 0x3db   : > { %400 = vst.msk [vmem:[#allocation2] sm:$0xff] %vm277_vm0, %v399_v39 }
 0x3dc PF: > { %p590_p8 = scmp.ne.s32.totalorder %s842_s24, 3 }
 0x3dd   : > { %s1162_s3 = sld [smem:[#allocation18_spill]] (!%p590_p8) }
 0x3de   : > { %404 = sbr.rel (%p590_p8) target bundleno = 1000 (0x3e8), region = 48 }
 0x3e3   : > { %v405_v40 = vld [vmem:[#allocation2] sm:$0xff] }
 0x3e4   : > { %v707_v41 = vld [vmem:[%s1162_s3] ss:$0 sm:$0xff] }
 0x3e5   : > { %v410_v42 = vadd.f32 %v707_v41, %v405_v40 }
 0x3e7   : > { %411 = vst.msk [vmem:[%s244_s15] sm:$0xff] %vm277_vm0, %v410_v42 }
 0x3e8 PF: > { %s593_s26 = sshll.u32 %s846_s25, 3  ;;  %s431_s11 = sshll.u32 %s244_s15, 4  ;;  %s432_s11 = int_to_ptr.vmem [resolvable:$true] %s431_s11 }
 0x3e9   : > { %s429_s13 = scalar_lea.hbm %s1133_s4, %s593_s26  ;;  %s1163_s29 = sand.u32 1, %s834_s22  }
 0x3ea   : > { %s433_s27 = sshll.u32 %s429_s13, 4  ;;  %s413_s0 = scalar_lea.sflag [#allocation4], %s1163_s29  ;;  %s434_s27 = int_to_ptr.hbm [resolvable:$true] %s433_s27 }
 0x3eb   : > { %s722_s16 = sshra.s32 %s434_s27, 4  ;;  %s728_s3 = scalar_lea.hbm %s1133_s4, 16  ;;  %s723_s16 = int_to_ptr.hbm [resolvable:$true] %s722_s16 }
 0x3ec   : > { %s724_s8 = scalar_lea.hbm %s723_s16, 8  ;;  %p729_p0 = scmp.lt.s32.totalorder %s723_s16, %s1133_s4 }
 0x3ed   : > { %p725_p9 = scmp.ne.s32.totalorder %s723_s16, %s724_s8  ;;  %p730_p1 = scmp.lt.s32.totalorder %s728_s3, %s724_s8 }
 0x3ef   : > { %p726_p10 = pnand %p725_p9, %p963_p3  ;;  %p731_p4 = por %p730_p1, %p729_p0 }
 0x3f1   : > { %p727_p11 = pneg %p726_p10 }
 0x3f3   : > { %p732_p2 = pnand %p731_p4, %p727_p11 }
 0x3f5   : > { %735 = shalt.err (!%p732_p2)
}
 0x3f6   : > { %601 = dma.vmem_to_hbm [thread:$0]  (%p963_p3), %s432_s11, 128, %s434_s27, %s413_s0  }
 0x3f7   : > { %s594_s29 = sshll.u32 %s846_s25, 2  ;;  %s1164_s15 = scalar_lea.vmem [#allocation5], %s1032_s7 }
 0x3f8   : > { %s448_s1 = sshll.u32 %s1164_s15, 4  ;;  %s444_s2 = sadd.s32 %s842_s24, %s594_s29  ;;  %s449_s1 = int_to_ptr.vmem [resolvable:$true] %s448_s1 }
 0x3f9   : > { %s595_s26 = sshll.u32 %s444_s2, 3  ;;  %s1165_s16 = sand.u32 1, %s822_s19  }
 0x3fa   : > { %s446_s3 = scalar_lea.hbm %s1134_s5, %s595_s26  ;;  %s418_s10 = scalar_lea.sflag [#allocation6], %s1165_s16 }
 0x3fb   : > { %s450_s13 = sshll.u32 %s446_s3, 4  ;;  %s756_s24 = scalar_lea.hbm %s1134_s5, 64  ;;  %s451_s13 = int_to_ptr.hbm [resolvable:$true] %s450_s13 }
 0x3fc   : > { %s750_s8 = sshra.s32 %s451_s13, 4  ;;  %s751_s8 = int_to_ptr.hbm [resolvable:$true] %s750_s8 }
 0x3fd   : > { %s752_s9 = scalar_lea.hbm %s751_s8, 8  ;;  %p757_p8 = scmp.lt.s32.totalorder %s751_s8, %s1134_s5 }
 0x3fe   : > { %p753_p5 = scmp.ne.s32.totalorder %s751_s8, %s752_s9  ;;  %p758_p9 = scmp.lt.s32.totalorder %s756_s24, %s752_s9 }
 0x400   : > { %p754_p3 = pnand %p753_p5, %p992_p12  ;;  %p759_p10 = por %p758_p9, %p757_p8 }
 0x402   : > { %p755_p6 = pneg %p754_p3 }
 0x404   : > { %p760_p11 = pnand %p759_p10, %p755_p6 }
 0x406   : > { %763 = shalt.err (!%p760_p11)
}
 0x407   : > { %602 = dma.vmem_to_hbm [thread:$0]  (%p992_p12), %s449_s1, 128, %s451_s13, %s418_s10  }
 0x408 PF: > { %p612_p0 = scmp.ge.s32.totalorder %s858_s28, 2  ;;  %s462_s11 = sand.u32 1, %s830_s21  }
 0x409   : > { %s463_s29 = scalar_lea.sflag [#allocation4], %s462_s11 }
 0x40a   : > { %p606_p1 = pnand %p612_p0, %p980_p7 }
 0x40c   : > { %p607_p4 = pneg %p606_p1 }
 0x40e   : > { %809 = dma.done.wait (%p607_p4), %s463_s29, 128  }
 0x40f   : > { %811 = vsyncadd (%p607_p4), %s463_s29, 4294967168  ;;  %s472_s15 = sand.u32 1, %s818_s18   ;;  %p609_p2 = pnand %p612_p0, %p1004_p13 }
 0x410   : > { %s473_s17 = scalar_lea.sflag [#allocation6], %s472_s15 }
 0x411   : > { %p610_p5 = pneg %p609_p2 }
 0x413   : > { %813 = dma.done.wait (%p610_p5), %s473_s17, 128  }
 0x414   : > { %815 = vsyncadd (%p610_p5), %s473_s17, 4294967168  ;;  %s22_s28 = sadd.s32 1, %s858_s28   ;;  %s1166_s14 = sld [smem:[#allocation9_spill]] }
 0x415   : > { %p19_p12 = scmp.ge.s32.totalorder %s22_s28, 10   ;;  %s1167_s23 = sld [smem:[#allocation14_spill]] }
 0x416   : > { %s1168_s24 = sld [smem:[#allocation10_spill]]  ;;  %s1172_s18 = smov %s822_s19 }
 0x417   : > { %s1169_s25 = sld [smem:[#allocation11_spill]]  ;;  %s1173_s19 = smov %s826_s20 }
 0x418   : > { %s1170_s26 = sld [smem:[#allocation12_spill]]  ;;  %s1174_s20 = smov %s1000_s30 }
 0x419   : > { %s1171_s27 = sld [smem:[#allocation13_spill]]  ;;  %s1175_s21 = smov %s834_s22 }
 0x41a   : > { %s1176_s22 = smov %s1166_s14  ;;  %21 = sbr.rel (!%p19_p12) target bundleno = 14 (0xe), region = 102 }
 0x41f   :  { %479 = vsyncpa [#allocation4], 1 }
 0x420   :  { %481 = vsyncpa [#allocation4 + $0x1], 1 }
 0x421   :  { %482 = vsyncpa [#allocation6], 1 }
 0x422   :  { %484 = vsyncpa [#allocation6 + $0x1], 1 }

</bundles_post_ra>
